<compile_context>
chip_gen: v5e
topology: v5e:2x2
jax: 0.10.0
libtpu: 0.0.40
codegen_flags: <defaults>
</compile_context>

<pallas_src>
import functools

import jax
import jax.numpy as jnp
from jax import lax
from jax.experimental import pallas as pl
from jax.experimental.pallas import tpu as pltpu


def _relu6(x):
    return jnp.clip(x, 0.0, 6.0)


def _chan_matmul(w, x):
    """(Co, Ci) @ (Ci, P) -> (Co, P) in f32 (single image)."""
    co, ci = w.shape
    if ci <= 32:
        acc = w[:, 0:1] * x[0:1, :]
        for k in range(1, ci):
            acc = acc + w[:, k:k + 1] * x[k:k + 1, :]
        return acc
    return jnp.dot(w, x, preferred_element_type=jnp.float32)


def _chan_matmul_batched(w, x):
    """(Co, Ci) applied to (B, Ci, P) -> (B, Co, P) in f32.

    For tiny channel counts the MXU is <1% utilized, so unroll the
    contraction as lane-dense VPU FMAs over the whole batch block; large
    channel counts go to the MXU per image.
    """
    co, ci = w.shape
    if ci <= 32:
        acc = w[None, :, 0:1] * x[:, 0:1, :]
        for k in range(1, ci):
            acc = acc + w[None, :, k:k + 1] * x[:, k:k + 1, :]
        return acc
    return jnp.stack([jnp.dot(w, x[b], preferred_element_type=jnp.float32)
                      for b in range(x.shape[0])], axis=0)


def _inv_bottleneck_kernel(*refs, W, add, has_sel):
    """One batch block per grid step, handled as a (B, C, H*W) lane-dense value."""
    if has_sel:
        (x_ref, w1_ref, s1_ref, b1_ref, wm_ref, s2_ref, b2_ref,
         w3_ref, s3_ref, b3_ref, sel_ref, out_ref) = refs
    else:
        (x_ref, w1_ref, s1_ref, b1_ref, wm_ref, s2_ref, b2_ref,
         w3_ref, s3_ref, b3_ref, out_ref) = refs
        sel_ref = None

    x = x_ref[...]                         # (B, Cin, H*W)   lane-dense
    w1 = w1_ref[...]                       # (Cmid, Cin)
    w3 = w3_ref[...]                       # (Cout, Cmid)
    s1, b1 = s1_ref[...], b1_ref[...]      # (Cmid, 1)
    s2, b2 = s2_ref[...], b2_ref[...]      # (Cmid, 1)
    s3, b3 = s3_ref[...], b3_ref[...]      # (Cout, 1)  double-BN pre-folded

    B = x.shape[0]
    HW = x.shape[-1]

    # ---- cv1: 1x1 conv + BN1 + ReLU6 -------------------------------------
    a = _chan_matmul_batched(w1, x)                     # (B, Cmid, H*W)
    a = _relu6(a * s1[None] + b1[None])

    # ---- cv2: 3x3 depthwise conv, pad=1 ----------------------------------
    # A tap at spatial offset (dy-1, dx-1) is a constant lane shift of
    # (dy-1)*W + (dx-1) in the flattened layout.  Shifts are static slices of
    # an aligned doubled copy; out-of-image contributions are killed by the
    # border masks that the wrapper pre-folded into wm[t].
    a2 = jnp.concatenate([a, a], axis=-1)               # (B, Cmid, 2*H*W)
    acc = a * wm_ref[4][None]                           # centre tap (dy=dx=1)
    for dy in range(3):
        for dx in range(3):
            if dy == 1 and dx == 1:
                continue
            t = 3 * dy + dx
            k = ((dy - 1) * W + (dx - 1)) % HW
            acc = acc + a2[:, :, k:k + HW] * wm_ref[t][None]

    if has_sel:
        # ---- stride > 1: keep only the s-strided positions, then the tail
        # (BN2 / ReLU6 / cv3 / writeback) runs on Ho*Wo positions only.
        sel = sel_ref[...]                               # (H*W, Ho*Wo)
        for bi in range(B):
            g = jnp.dot(acc[bi], sel,
                        preferred_element_type=jnp.float32,
                        precision=lax.Precision.HIGHEST)
            h = _relu6(g * s2 + b2)                      # (Cmid, Ho*Wo)
            c = _chan_matmul(w3, h)                      # (Cout, Ho*Wo)
            out_ref[bi] = (c * s3 + b3).astype(out_ref.dtype)
        return

    # ---- BN2 + ReLU6, cv3 (1x1), folded double-BN3, residual --------------
    h = _relu6(acc * s2[None] + b2[None])                # (B, Cmid, H*W)
    c = _chan_matmul_batched(w3, h)                      # (B, Cout, H*W)
    c = c * s3[None] + b3[None]                          # BN3 twice, folded
    if add:
        c = c + x
    out_ref[...] = c.astype(out_ref.dtype)


def _pick_batch_block(n, per_image_bytes, budget_bytes=8 * 1024 * 1024):
    """Largest divisor of n that (a) keeps >=2 grid steps (v7x has 2 TCs) and
    (b) stays under a per-block VMEM budget."""
    cap = max(1, budget_bytes // max(per_image_bytes, 1))
    target = max(1, min(n // 2 if n > 1 else 1, cap))
    for bt in range(target, 0, -1):
        if n % bt == 0:
            return bt
    return 1


def inverst_bottleneck(x_nchw, params, *, stride, add, b_tile=None):
    """NCHW in/out. Folds BN, builds lane-dense operands, launches the kernel."""
    eps = 1e-5
    N, Cin, H, W = x_nchw.shape
    HW = H * W
    Ho = (H + 2 - 3) // stride + 1
    Wo = (W + 2 - 3) // stride + 1
    assert not (add and stride != 1), "residual add requires stride == 1"

    # ---- fold BN running stats into per-channel scale / bias (glue) ------
    def fold(g, bta, m, v):
        s = g / jnp.sqrt(v + eps)
        return s.astype(jnp.float32), (bta - m * s).astype(jnp.float32)

    s1, b1 = fold(*params['bn1'])
    s2, b2 = fold(*params['bn2'])
    s3, b3 = fold(*params['bn3'])
    # cv3's "activation" is its own BN (actFun typo) -> BN applied twice.
    # Fold the two affines into one:  (x*s + b)*s + b  ==  x*s^2 + b*(s + 1)
    s3, b3 = s3 * s3, b3 * (s3 + 1.0)

    # column vectors: broadcast across the lane (H*W) axis inside the kernel
    s1, b1 = s1.reshape(-1, 1), b1.reshape(-1, 1)
    s2, b2 = s2.reshape(-1, 1), b2.reshape(-1, 1)
    s3, b3 = s3.reshape(-1, 1), b3.reshape(-1, 1)

    # ---- weights: PyTorch layouts -> kernel layouts (glue) ---------------
    w1 = params['w1'][:, :, 0, 0].astype(jnp.float32)          # (Cmid, Cin)
    Cmid = w1.shape[0]
    w2 = params['w2'].reshape(Cmid, 9).astype(jnp.float32)     # (Cmid, 9)
    w3 = params['w3'][:, :, 0, 0].astype(jnp.float32)          # (Cout, Cmid)
    Cout = w3.shape[0]

    # ---- pre-masked depthwise taps: wm[t] = w2[:, t] * border_mask[t] ----
    # (9, Cmid, H*W); tiny at these sizes.  At large spatial sizes keep the
    # (9, H*W) mask separate instead (TODO below covers that regime anyway).
    hh = jnp.arange(H)
    ww = jnp.arange(W)
    rows = []
    for dy in range(3):
        for dx in range(3):
            mrow = ((hh + dy - 1 >= 0) & (hh + dy - 1 < H)).astype(jnp.float32)
            mcol = ((ww + dx - 1 >= 0) & (ww + dx - 1 < W)).astype(jnp.float32)
            rows.append((mrow[:, None] * mcol[None, :]).reshape(HW))
    mask = jnp.stack(rows, axis=0)                             # (9, H*W)
    wm = w2.T[:, :, None] * mask[:, None, :]                   # (9, Cmid, H*W)

    # ---- NCHW -> (N, C, H*W): a pure reshape (no transpose) --------------
    x3 = x_nchw.reshape(N, Cin, HW).astype(jnp.float32)

    if b_tile is None:
        per_image = (Cin + Cout + 5 * Cmid) * HW * 4           # rough estimate
        b_tile = _pick_batch_block(N, per_image)
    grid = (N // b_tile,)

    has_sel = stride > 1
    inputs = [x3, w1, s1, b1, wm, s2, b2, w3, s3, b3]

    def full_spec(a):
        zeros = (0,) * a.ndim
        return pl.BlockSpec(a.shape, lambda n: zeros)

    in_specs = ([pl.BlockSpec((b_tile, Cin, HW), lambda n: (n, 0, 0))]
                + [full_spec(a) for a in inputs[1:]])
    if has_sel:
        # 0/1 matrix selecting the s-strided output positions so the kernel
        # only does BN2/ReLU6/cv3/writeback on (Ho*Wo) positions.
        # TODO(synk): at large spatial sizes, tile H into row strips with a
        # 1-row halo and stride in-strip instead of a dense selection matrix.
        src = ((jnp.arange(Ho) * stride)[:, None] * W
               + (jnp.arange(Wo) * stride)[None, :]).reshape(-1)
        sel = jnp.zeros((HW, Ho * Wo), jnp.float32).at[
            src, jnp.arange(Ho * Wo)].set(1.0)
        inputs.append(sel)
        in_specs.append(full_spec(sel))

    kernel = functools.partial(_inv_bottleneck_kernel, W=W,
                               add=add, has_sel=has_sel)

    y = pl.pallas_call(
        kernel,
        out_shape=jax.ShapeDtypeStruct((N, Cout, Ho * Wo), jnp.float32),
        grid=grid,
        in_specs=in_specs,
        out_specs=pl.BlockSpec((b_tile, Cout, Ho * Wo), lambda n: (n, 0, 0)),
        compiler_params=pltpu.CompilerParams(
            dimension_semantics=("parallel",)),
    )(*inputs)

    return y.reshape(N, Cout, Ho, Wo)          # (N, Cout, Ho*Wo) is NCHW flat


# --------------------------- pure-JAX reference -----------------------------
def reference_nchw(x, p, stride, add):
    eps = 1e-5

    def bn(y, g, b, m, v):
        return ((y - m[None, :, None, None]) / jnp.sqrt(v[None, :, None, None] + eps)
                * g[None, :, None, None] + b[None, :, None, None])

    dn = ('NCHW', 'OIHW', 'NCHW')
    hp = lax.Precision.HIGHEST
    y = lax.conv_general_dilated(x, p['w1'], (1, 1), 'VALID',
                                 dimension_numbers=dn, precision=hp)
    y = jnp.clip(bn(y, *p['bn1']), 0.0, 6.0)
    y = lax.conv_general_dilated(y, p['w2'], (stride, stride), ((1, 1), (1, 1)),
                                 dimension_numbers=dn,
                                 feature_group_count=p['w2'].shape[0],
                                 precision=hp)
    y = jnp.clip(bn(y, *p['bn2']), 0.0, 6.0)
    y = lax.conv_general_dilated(y, p['w3'], (1, 1), 'VALID',
                                 dimension_numbers=dn, precision=hp)
    y = bn(bn(y, *p['bn3']), *p['bn3'])          # act == bn -> double BN
    return x + y if add else y


# --------------------------------- main --------------------------------------
if __name__ == "__main__":
    def bn_params(k, C):
        k1, k2, k3, k4 = jax.random.split(k, 4)
        gamma = 1.0 + 0.1 * jax.random.normal(k1, (C,), jnp.float32)
        beta = 0.1 * jax.random.normal(k2, (C,), jnp.float32)
        mean = 0.1 * jax.random.normal(k3, (C,), jnp.float32)
        var = jnp.abs(1.0 + 0.1 * jax.random.normal(k4, (C,), jnp.float32))
        return (gamma, beta, mean, var)

    def make_params(key, Cin, Cmid, Cout):
        ks = jax.random.split(key, 6)
        return {
            'w1': 0.3 * jax.random.normal(ks[0], (Cmid, Cin, 1, 1), jnp.float32),  # OIHW
            'w2': 0.3 * jax.random.normal(ks[1], (Cmid, 1, 3, 3), jnp.float32),    # depthwise
            'w3': 0.3 * jax.random.normal(ks[2], (Cout, Cmid, 1, 1), jnp.float32),
            'bn1': bn_params(ks[3], Cmid),
            'bn2': bn_params(ks[4], Cmid),
            'bn3': bn_params(ks[5], Cout),
        }

    key = jax.random.PRNGKey(0)
    k_pa, k_pb, k_xa, k_xb = jax.random.split(key, 4)

    # --- Case A: inverstBottleneck(ch_in=4, ch_out=4, s=1, e=2.0) -> residual
    N, Cin, H, W = 2, 4, 16, 16
    Cout, e, stride = 4, 2.0, 1
    Cmid = int(Cin * e)
    add = (Cin == Cout)

    params_a = make_params(k_pa, Cin, Cmid, Cout)
    x_a = jax.random.normal(k_xa, (N, Cin, H, W), jnp.float32)

    out_a = jax.block_until_ready(
        inverst_bottleneck(x_a, params_a, stride=stride, add=add))
    ref_a = reference_nchw(x_a, params_a, stride, add)
    assert out_a.shape == ref_a.shape, (out_a.shape, ref_a.shape)
    assert jnp.allclose(out_a, ref_a, atol=1e-4, rtol=1e-4), \
        float(jnp.max(jnp.abs(out_a - ref_a)))

    # --- Case B: inverstBottleneck(ch_in=4, ch_out=8, s=1, e=2.0) -> no residual
    Cout_b = 8
    params_b = make_params(k_pb, Cin, Cmid, Cout_b)
    x_b = jax.random.normal(k_xb, (N, Cin, H, W), jnp.float32)

    out_b = jax.block_until_ready(
        inverst_bottleneck(x_b, params_b, stride=1, add=False))
    ref_b = reference_nchw(x_b, params_b, 1, False)
    assert out_b.shape == ref_b.shape, (out_b.shape, ref_b.shape)
    assert jnp.allclose(out_b, ref_b, atol=1e-4, rtol=1e-4), \
        float(jnp.max(jnp.abs(out_b - ref_b)))

    print("KERNEL_OK")
</pallas_src>

<mosaic_0001>
module attributes {stable_mosaic.version = 11 : i64} {
  func.func @_inv_bottleneck_kernel(%arg0: i32, %arg1: memref<1x4x256xf32, #tpu.memory_space<vmem>>, %arg2: memref<8x4xf32, #tpu.memory_space<vmem>>, %arg3: memref<8x1xf32, #tpu.memory_space<vmem>>, %arg4: memref<8x1xf32, #tpu.memory_space<vmem>>, %arg5: memref<9x8x256xf32, #tpu.memory_space<vmem>>, %arg6: memref<8x1xf32, #tpu.memory_space<vmem>>, %arg7: memref<8x1xf32, #tpu.memory_space<vmem>>, %arg8: memref<4x8xf32, #tpu.memory_space<vmem>>, %arg9: memref<4x1xf32, #tpu.memory_space<vmem>>, %arg10: memref<4x1xf32, #tpu.memory_space<vmem>>, %arg11: memref<1x4x256xf32, #tpu.memory_space<vmem>>) attributes {dimension_semantics = [#tpu.dimension_semantics<parallel>], iteration_bounds = array<i64: 2>, scalar_prefetch = 0 : i64, scratch_operands = 0 : i64, tpu.core_type = #tpu.core_type<tc>, window_params = [{transform_indices = @transform_0, window_bounds = array<i64: 1, 4, 256>}, {pipeline_mode = #tpu.pipeline_mode<synchronous>, transform_indices = @transform_1, window_bounds = array<i64: 8, 4>}, {pipeline_mode = #tpu.pipeline_mode<synchronous>, transform_indices = @transform_2, window_bounds = array<i64: 8, 1>}, {pipeline_mode = #tpu.pipeline_mode<synchronous>, transform_indices = @transform_3, window_bounds = array<i64: 8, 1>}, {pipeline_mode = #tpu.pipeline_mode<synchronous>, transform_indices = @transform_4, window_bounds = array<i64: 9, 8, 256>}, {pipeline_mode = #tpu.pipeline_mode<synchronous>, transform_indices = @transform_5, window_bounds = array<i64: 8, 1>}, {pipeline_mode = #tpu.pipeline_mode<synchronous>, transform_indices = @transform_6, window_bounds = array<i64: 8, 1>}, {pipeline_mode = #tpu.pipeline_mode<synchronous>, transform_indices = @transform_7, window_bounds = array<i64: 4, 8>}, {pipeline_mode = #tpu.pipeline_mode<synchronous>, transform_indices = @transform_8, window_bounds = array<i64: 4, 1>}, {pipeline_mode = #tpu.pipeline_mode<synchronous>, transform_indices = @transform_9, window_bounds = array<i64: 4, 1>}, {transform_indices = @transform_10, window_bounds = array<i64: 1, 4, 256>}]} {
    %c0 = arith.constant 0 : index
    %c0_0 = arith.constant 0 : index
    %c0_1 = arith.constant 0 : index
    %0 = vector.load %arg1[%c0, %c0_0, %c0_1] : memref<1x4x256xf32, #tpu.memory_space<vmem>>, vector<1x4x256xf32>
    %c0_2 = arith.constant 0 : index
    %c0_3 = arith.constant 0 : index
    %1 = vector.load %arg2[%c0_2, %c0_3] : memref<8x4xf32, #tpu.memory_space<vmem>>, vector<8x4xf32>
    %c0_4 = arith.constant 0 : index
    %c0_5 = arith.constant 0 : index
    %2 = vector.load %arg8[%c0_4, %c0_5] : memref<4x8xf32, #tpu.memory_space<vmem>>, vector<4x8xf32>
    %c0_6 = arith.constant 0 : index
    %c0_7 = arith.constant 0 : index
    %3 = vector.load %arg3[%c0_6, %c0_7] : memref<8x1xf32, #tpu.memory_space<vmem>>, vector<8x1xf32>
    %c0_8 = arith.constant 0 : index
    %c0_9 = arith.constant 0 : index
    %4 = vector.load %arg4[%c0_8, %c0_9] : memref<8x1xf32, #tpu.memory_space<vmem>>, vector<8x1xf32>
    %c0_10 = arith.constant 0 : index
    %c0_11 = arith.constant 0 : index
    %5 = vector.load %arg6[%c0_10, %c0_11] : memref<8x1xf32, #tpu.memory_space<vmem>>, vector<8x1xf32>
    %c0_12 = arith.constant 0 : index
    %c0_13 = arith.constant 0 : index
    %6 = vector.load %arg7[%c0_12, %c0_13] : memref<8x1xf32, #tpu.memory_space<vmem>>, vector<8x1xf32>
    %c0_14 = arith.constant 0 : index
    %c0_15 = arith.constant 0 : index
    %7 = vector.load %arg9[%c0_14, %c0_15] : memref<4x1xf32, #tpu.memory_space<vmem>>, vector<4x1xf32>
    %c0_16 = arith.constant 0 : index
    %c0_17 = arith.constant 0 : index
    %8 = vector.load %arg10[%c0_16, %c0_17] : memref<4x1xf32, #tpu.memory_space<vmem>>, vector<4x1xf32>
    %9 = vector.extract_strided_slice %1 {offsets = [0, 0], sizes = [8, 1], strides = [1, 1]} : vector<8x4xf32> to vector<8x1xf32>
    %10 = vector.shape_cast %9 : vector<8x1xf32> to vector<1x8x1xf32>
    %11 = vector.extract_strided_slice %0 {offsets = [0, 0, 0], sizes = [1, 1, 256], strides = [1, 1, 1]} : vector<1x4x256xf32> to vector<1x1x256xf32>
    %12 = vector.broadcast %10 : vector<1x8x1xf32> to vector<1x8x256xf32>
    %13 = vector.broadcast %11 : vector<1x1x256xf32> to vector<1x8x256xf32>
    %14 = arith.mulf %12, %13 : vector<1x8x256xf32>
    %15 = vector.extract_strided_slice %1 {offsets = [0, 1], sizes = [8, 1], strides = [1, 1]} : vector<8x4xf32> to vector<8x1xf32>
    %16 = vector.shape_cast %15 : vector<8x1xf32> to vector<1x8x1xf32>
    %17 = vector.extract_strided_slice %0 {offsets = [0, 1, 0], sizes = [1, 1, 256], strides = [1, 1, 1]} : vector<1x4x256xf32> to vector<1x1x256xf32>
    %18 = vector.broadcast %16 : vector<1x8x1xf32> to vector<1x8x256xf32>
    %19 = vector.broadcast %17 : vector<1x1x256xf32> to vector<1x8x256xf32>
    %20 = arith.mulf %18, %19 : vector<1x8x256xf32>
    %21 = arith.addf %14, %20 : vector<1x8x256xf32>
    %22 = vector.extract_strided_slice %1 {offsets = [0, 2], sizes = [8, 1], strides = [1, 1]} : vector<8x4xf32> to vector<8x1xf32>
    %23 = vector.shape_cast %22 : vector<8x1xf32> to vector<1x8x1xf32>
    %24 = vector.extract_strided_slice %0 {offsets = [0, 2, 0], sizes = [1, 1, 256], strides = [1, 1, 1]} : vector<1x4x256xf32> to vector<1x1x256xf32>
    %25 = vector.broadcast %23 : vector<1x8x1xf32> to vector<1x8x256xf32>
    %26 = vector.broadcast %24 : vector<1x1x256xf32> to vector<1x8x256xf32>
    %27 = arith.mulf %25, %26 : vector<1x8x256xf32>
    %28 = arith.addf %21, %27 : vector<1x8x256xf32>
    %29 = vector.extract_strided_slice %1 {offsets = [0, 3], sizes = [8, 1], strides = [1, 1]} : vector<8x4xf32> to vector<8x1xf32>
    %30 = vector.shape_cast %29 : vector<8x1xf32> to vector<1x8x1xf32>
    %31 = vector.extract_strided_slice %0 {offsets = [0, 3, 0], sizes = [1, 1, 256], strides = [1, 1, 1]} : vector<1x4x256xf32> to vector<1x1x256xf32>
    %32 = vector.broadcast %30 : vector<1x8x1xf32> to vector<1x8x256xf32>
    %33 = vector.broadcast %31 : vector<1x1x256xf32> to vector<1x8x256xf32>
    %34 = arith.mulf %32, %33 : vector<1x8x256xf32>
    %35 = arith.addf %28, %34 : vector<1x8x256xf32>
    %36 = vector.shape_cast %3 : vector<8x1xf32> to vector<1x8x1xf32>
    %37 = vector.broadcast %36 : vector<1x8x1xf32> to vector<1x8x256xf32>
    %38 = arith.mulf %35, %37 : vector<1x8x256xf32>
    %39 = vector.shape_cast %4 : vector<8x1xf32> to vector<1x8x1xf32>
    %40 = vector.broadcast %39 : vector<1x8x1xf32> to vector<1x8x256xf32>
    %41 = arith.addf %38, %40 : vector<1x8x256xf32>
    %cst = arith.constant 0.000000e+00 : f32
    %cst_18 = arith.constant 6.000000e+00 : f32
    %42 = vector.broadcast %cst : f32 to vector<1x8x256xf32>
    %43 = arith.maximumf %42, %41 : vector<1x8x256xf32>
    %44 = vector.broadcast %cst_18 : f32 to vector<1x8x256xf32>
    %45 = arith.minimumf %44, %43 : vector<1x8x256xf32>
    %46 = tpu.concatenate %45, %45 in 2 : vector<1x8x256xf32>, vector<1x8x256xf32> -> vector<1x8x512xf32>
    %c4 = arith.constant 4 : index
    %c0_19 = arith.constant 0 : index
    %c0_20 = arith.constant 0 : index
    %47 = vector.load %arg5[%c4, %c0_19, %c0_20] : memref<9x8x256xf32, #tpu.memory_space<vmem>>, vector<1x8x256xf32>
    %48 = vector.shape_cast %47 : vector<1x8x256xf32> to vector<8x256xf32>
    %49 = vector.shape_cast %48 : vector<8x256xf32> to vector<1x8x256xf32>
    %50 = arith.mulf %45, %49 : vector<1x8x256xf32>
    %51 = vector.extract_strided_slice %46 {offsets = [0, 0, 239], sizes = [1, 8, 256], strides = [1, 1, 1]} : vector<1x8x512xf32> to vector<1x8x256xf32>
    %c0_21 = arith.constant 0 : index
    %c0_22 = arith.constant 0 : index
    %c0_23 = arith.constant 0 : index
    %52 = vector.load %arg5[%c0_21, %c0_22, %c0_23] : memref<9x8x256xf32, #tpu.memory_space<vmem>>, vector<1x8x256xf32>
    %53 = vector.shape_cast %52 : vector<1x8x256xf32> to vector<8x256xf32>
    %54 = vector.shape_cast %53 : vector<8x256xf32> to vector<1x8x256xf32>
    %55 = arith.mulf %51, %54 : vector<1x8x256xf32>
    %56 = arith.addf %50, %55 : vector<1x8x256xf32>
    %57 = vector.extract_strided_slice %46 {offsets = [0, 0, 240], sizes = [1, 8, 256], strides = [1, 1, 1]} : vector<1x8x512xf32> to vector<1x8x256xf32>
    %c1 = arith.constant 1 : index
    %c0_24 = arith.constant 0 : index
    %c0_25 = arith.constant 0 : index
    %58 = vector.load %arg5[%c1, %c0_24, %c0_25] : memref<9x8x256xf32, #tpu.memory_space<vmem>>, vector<1x8x256xf32>
    %59 = vector.shape_cast %58 : vector<1x8x256xf32> to vector<8x256xf32>
    %60 = vector.shape_cast %59 : vector<8x256xf32> to vector<1x8x256xf32>
    %61 = arith.mulf %57, %60 : vector<1x8x256xf32>
    %62 = arith.addf %56, %61 : vector<1x8x256xf32>
    %63 = vector.extract_strided_slice %46 {offsets = [0, 0, 241], sizes = [1, 8, 256], strides = [1, 1, 1]} : vector<1x8x512xf32> to vector<1x8x256xf32>
    %c2 = arith.constant 2 : index
    %c0_26 = arith.constant 0 : index
    %c0_27 = arith.constant 0 : index
    %64 = vector.load %arg5[%c2, %c0_26, %c0_27] : memref<9x8x256xf32, #tpu.memory_space<vmem>>, vector<1x8x256xf32>
    %65 = vector.shape_cast %64 : vector<1x8x256xf32> to vector<8x256xf32>
    %66 = vector.shape_cast %65 : vector<8x256xf32> to vector<1x8x256xf32>
    %67 = arith.mulf %63, %66 : vector<1x8x256xf32>
    %68 = arith.addf %62, %67 : vector<1x8x256xf32>
    %69 = vector.extract_strided_slice %46 {offsets = [0, 0, 255], sizes = [1, 8, 256], strides = [1, 1, 1]} : vector<1x8x512xf32> to vector<1x8x256xf32>
    %c3 = arith.constant 3 : index
    %c0_28 = arith.constant 0 : index
    %c0_29 = arith.constant 0 : index
    %70 = vector.load %arg5[%c3, %c0_28, %c0_29] : memref<9x8x256xf32, #tpu.memory_space<vmem>>, vector<1x8x256xf32>
    %71 = vector.shape_cast %70 : vector<1x8x256xf32> to vector<8x256xf32>
    %72 = vector.shape_cast %71 : vector<8x256xf32> to vector<1x8x256xf32>
    %73 = arith.mulf %69, %72 : vector<1x8x256xf32>
    %74 = arith.addf %68, %73 : vector<1x8x256xf32>
    %75 = vector.extract_strided_slice %46 {offsets = [0, 0, 1], sizes = [1, 8, 256], strides = [1, 1, 1]} : vector<1x8x512xf32> to vector<1x8x256xf32>
    %c5 = arith.constant 5 : index
    %c0_30 = arith.constant 0 : index
    %c0_31 = arith.constant 0 : index
    %76 = vector.load %arg5[%c5, %c0_30, %c0_31] : memref<9x8x256xf32, #tpu.memory_space<vmem>>, vector<1x8x256xf32>
    %77 = vector.shape_cast %76 : vector<1x8x256xf32> to vector<8x256xf32>
    %78 = vector.shape_cast %77 : vector<8x256xf32> to vector<1x8x256xf32>
    %79 = arith.mulf %75, %78 : vector<1x8x256xf32>
    %80 = arith.addf %74, %79 : vector<1x8x256xf32>
    %81 = vector.extract_strided_slice %46 {offsets = [0, 0, 15], sizes = [1, 8, 256], strides = [1, 1, 1]} : vector<1x8x512xf32> to vector<1x8x256xf32>
    %c6 = arith.constant 6 : index
    %c0_32 = arith.constant 0 : index
    %c0_33 = arith.constant 0 : index
    %82 = vector.load %arg5[%c6, %c0_32, %c0_33] : memref<9x8x256xf32, #tpu.memory_space<vmem>>, vector<1x8x256xf32>
    %83 = vector.shape_cast %82 : vector<1x8x256xf32> to vector<8x256xf32>
    %84 = vector.shape_cast %83 : vector<8x256xf32> to vector<1x8x256xf32>
    %85 = arith.mulf %81, %84 : vector<1x8x256xf32>
    %86 = arith.addf %80, %85 : vector<1x8x256xf32>
    %87 = vector.extract_strided_slice %46 {offsets = [0, 0, 16], sizes = [1, 8, 256], strides = [1, 1, 1]} : vector<1x8x512xf32> to vector<1x8x256xf32>
    %c7 = arith.constant 7 : index
    %c0_34 = arith.constant 0 : index
    %c0_35 = arith.constant 0 : index
    %88 = vector.load %arg5[%c7, %c0_34, %c0_35] : memref<9x8x256xf32, #tpu.memory_space<vmem>>, vector<1x8x256xf32>
    %89 = vector.shape_cast %88 : vector<1x8x256xf32> to vector<8x256xf32>
    %90 = vector.shape_cast %89 : vector<8x256xf32> to vector<1x8x256xf32>
    %91 = arith.mulf %87, %90 : vector<1x8x256xf32>
    %92 = arith.addf %86, %91 : vector<1x8x256xf32>
    %93 = vector.extract_strided_slice %46 {offsets = [0, 0, 17], sizes = [1, 8, 256], strides = [1, 1, 1]} : vector<1x8x512xf32> to vector<1x8x256xf32>
    %c8 = arith.constant 8 : index
    %c0_36 = arith.constant 0 : index
    %c0_37 = arith.constant 0 : index
    %94 = vector.load %arg5[%c8, %c0_36, %c0_37] : memref<9x8x256xf32, #tpu.memory_space<vmem>>, vector<1x8x256xf32>
    %95 = vector.shape_cast %94 : vector<1x8x256xf32> to vector<8x256xf32>
    %96 = vector.shape_cast %95 : vector<8x256xf32> to vector<1x8x256xf32>
    %97 = arith.mulf %93, %96 : vector<1x8x256xf32>
    %98 = arith.addf %92, %97 : vector<1x8x256xf32>
    %99 = vector.shape_cast %5 : vector<8x1xf32> to vector<1x8x1xf32>
    %100 = vector.broadcast %99 : vector<1x8x1xf32> to vector<1x8x256xf32>
    %101 = arith.mulf %98, %100 : vector<1x8x256xf32>
    %102 = vector.shape_cast %6 : vector<8x1xf32> to vector<1x8x1xf32>
    %103 = vector.broadcast %102 : vector<1x8x1xf32> to vector<1x8x256xf32>
    %104 = arith.addf %101, %103 : vector<1x8x256xf32>
    %cst_38 = arith.constant 0.000000e+00 : f32
    %cst_39 = arith.constant 6.000000e+00 : f32
    %105 = vector.broadcast %cst_38 : f32 to vector<1x8x256xf32>
    %106 = arith.maximumf %105, %104 : vector<1x8x256xf32>
    %107 = vector.broadcast %cst_39 : f32 to vector<1x8x256xf32>
    %108 = arith.minimumf %107, %106 : vector<1x8x256xf32>
    %109 = vector.extract_strided_slice %2 {offsets = [0, 0], sizes = [4, 1], strides = [1, 1]} : vector<4x8xf32> to vector<4x1xf32>
    %110 = vector.shape_cast %109 : vector<4x1xf32> to vector<1x4x1xf32>
    %111 = vector.extract_strided_slice %108 {offsets = [0, 0, 0], sizes = [1, 1, 256], strides = [1, 1, 1]} : vector<1x8x256xf32> to vector<1x1x256xf32>
    %112 = vector.broadcast %110 : vector<1x4x1xf32> to vector<1x4x256xf32>
    %113 = vector.broadcast %111 : vector<1x1x256xf32> to vector<1x4x256xf32>
    %114 = arith.mulf %112, %113 : vector<1x4x256xf32>
    %115 = vector.extract_strided_slice %2 {offsets = [0, 1], sizes = [4, 1], strides = [1, 1]} : vector<4x8xf32> to vector<4x1xf32>
    %116 = vector.shape_cast %115 : vector<4x1xf32> to vector<1x4x1xf32>
    %117 = vector.extract_strided_slice %108 {offsets = [0, 1, 0], sizes = [1, 1, 256], strides = [1, 1, 1]} : vector<1x8x256xf32> to vector<1x1x256xf32>
    %118 = vector.broadcast %116 : vector<1x4x1xf32> to vector<1x4x256xf32>
    %119 = vector.broadcast %117 : vector<1x1x256xf32> to vector<1x4x256xf32>
    %120 = arith.mulf %118, %119 : vector<1x4x256xf32>
    %121 = arith.addf %114, %120 : vector<1x4x256xf32>
    %122 = vector.extract_strided_slice %2 {offsets = [0, 2], sizes = [4, 1], strides = [1, 1]} : vector<4x8xf32> to vector<4x1xf32>
    %123 = vector.shape_cast %122 : vector<4x1xf32> to vector<1x4x1xf32>
    %124 = vector.extract_strided_slice %108 {offsets = [0, 2, 0], sizes = [1, 1, 256], strides = [1, 1, 1]} : vector<1x8x256xf32> to vector<1x1x256xf32>
    %125 = vector.broadcast %123 : vector<1x4x1xf32> to vector<1x4x256xf32>
    %126 = vector.broadcast %124 : vector<1x1x256xf32> to vector<1x4x256xf32>
    %127 = arith.mulf %125, %126 : vector<1x4x256xf32>
    %128 = arith.addf %121, %127 : vector<1x4x256xf32>
    %129 = vector.extract_strided_slice %2 {offsets = [0, 3], sizes = [4, 1], strides = [1, 1]} : vector<4x8xf32> to vector<4x1xf32>
    %130 = vector.shape_cast %129 : vector<4x1xf32> to vector<1x4x1xf32>
    %131 = vector.extract_strided_slice %108 {offsets = [0, 3, 0], sizes = [1, 1, 256], strides = [1, 1, 1]} : vector<1x8x256xf32> to vector<1x1x256xf32>
    %132 = vector.broadcast %130 : vector<1x4x1xf32> to vector<1x4x256xf32>
    %133 = vector.broadcast %131 : vector<1x1x256xf32> to vector<1x4x256xf32>
    %134 = arith.mulf %132, %133 : vector<1x4x256xf32>
    %135 = arith.addf %128, %134 : vector<1x4x256xf32>
    %136 = vector.extract_strided_slice %2 {offsets = [0, 4], sizes = [4, 1], strides = [1, 1]} : vector<4x8xf32> to vector<4x1xf32>
    %137 = vector.shape_cast %136 : vector<4x1xf32> to vector<1x4x1xf32>
    %138 = vector.extract_strided_slice %108 {offsets = [0, 4, 0], sizes = [1, 1, 256], strides = [1, 1, 1]} : vector<1x8x256xf32> to vector<1x1x256xf32>
    %139 = vector.broadcast %137 : vector<1x4x1xf32> to vector<1x4x256xf32>
    %140 = vector.broadcast %138 : vector<1x1x256xf32> to vector<1x4x256xf32>
    %141 = arith.mulf %139, %140 : vector<1x4x256xf32>
    %142 = arith.addf %135, %141 : vector<1x4x256xf32>
    %143 = vector.extract_strided_slice %2 {offsets = [0, 5], sizes = [4, 1], strides = [1, 1]} : vector<4x8xf32> to vector<4x1xf32>
    %144 = vector.shape_cast %143 : vector<4x1xf32> to vector<1x4x1xf32>
    %145 = vector.extract_strided_slice %108 {offsets = [0, 5, 0], sizes = [1, 1, 256], strides = [1, 1, 1]} : vector<1x8x256xf32> to vector<1x1x256xf32>
    %146 = vector.broadcast %144 : vector<1x4x1xf32> to vector<1x4x256xf32>
    %147 = vector.broadcast %145 : vector<1x1x256xf32> to vector<1x4x256xf32>
    %148 = arith.mulf %146, %147 : vector<1x4x256xf32>
    %149 = arith.addf %142, %148 : vector<1x4x256xf32>
    %150 = vector.extract_strided_slice %2 {offsets = [0, 6], sizes = [4, 1], strides = [1, 1]} : vector<4x8xf32> to vector<4x1xf32>
    %151 = vector.shape_cast %150 : vector<4x1xf32> to vector<1x4x1xf32>
    %152 = vector.extract_strided_slice %108 {offsets = [0, 6, 0], sizes = [1, 1, 256], strides = [1, 1, 1]} : vector<1x8x256xf32> to vector<1x1x256xf32>
    %153 = vector.broadcast %151 : vector<1x4x1xf32> to vector<1x4x256xf32>
    %154 = vector.broadcast %152 : vector<1x1x256xf32> to vector<1x4x256xf32>
    %155 = arith.mulf %153, %154 : vector<1x4x256xf32>
    %156 = arith.addf %149, %155 : vector<1x4x256xf32>
    %157 = vector.extract_strided_slice %2 {offsets = [0, 7], sizes = [4, 1], strides = [1, 1]} : vector<4x8xf32> to vector<4x1xf32>
    %158 = vector.shape_cast %157 : vector<4x1xf32> to vector<1x4x1xf32>
    %159 = vector.extract_strided_slice %108 {offsets = [0, 7, 0], sizes = [1, 1, 256], strides = [1, 1, 1]} : vector<1x8x256xf32> to vector<1x1x256xf32>
    %160 = vector.broadcast %158 : vector<1x4x1xf32> to vector<1x4x256xf32>
    %161 = vector.broadcast %159 : vector<1x1x256xf32> to vector<1x4x256xf32>
    %162 = arith.mulf %160, %161 : vector<1x4x256xf32>
    %163 = arith.addf %156, %162 : vector<1x4x256xf32>
    %164 = vector.shape_cast %7 : vector<4x1xf32> to vector<1x4x1xf32>
    %165 = vector.broadcast %164 : vector<1x4x1xf32> to vector<1x4x256xf32>
    %166 = arith.mulf %163, %165 : vector<1x4x256xf32>
    %167 = vector.shape_cast %8 : vector<4x1xf32> to vector<1x4x1xf32>
    %168 = vector.broadcast %167 : vector<1x4x1xf32> to vector<1x4x256xf32>
    %169 = arith.addf %166, %168 : vector<1x4x256xf32>
    %170 = arith.addf %169, %0 : vector<1x4x256xf32>
    %c0_40 = arith.constant 0 : index
    %c0_41 = arith.constant 0 : index
    %c0_42 = arith.constant 0 : index
    %171 = vector.load %arg11[%c0_40, %c0_41, %c0_42] : memref<1x4x256xf32, #tpu.memory_space<vmem>>, vector<1x4x256xf32>
    tpu.vector_store %arg11[%c0_40, %c0_41, %c0_42], %170 {strides = array<i32>} : memref<1x4x256xf32, #tpu.memory_space<vmem>>, vector<1x4x256xf32>,
    return
  }
  func.func @transform_0(%arg0: i32) -> (i32, i32, i32) {
    %c0_i32 = arith.constant 0 : i32
    %c0_i32_0 = arith.constant 0 : i32
    %c0_i32_1 = arith.constant 0 : i32
    return %arg0, %c0_i32, %c0_i32_0 : i32, i32, i32
  }
  func.func @transform_1(%arg0: i32) -> (i32, i32) {
    %c0_i32 = arith.constant 0 : i32
    %c0_i32_0 = arith.constant 0 : i32
    %c0_i32_1 = arith.constant 0 : i32
    return %c0_i32, %c0_i32_0 : i32, i32
  }
  func.func @transform_2(%arg0: i32) -> (i32, i32) {
    %c0_i32 = arith.constant 0 : i32
    %c0_i32_0 = arith.constant 0 : i32
    %c0_i32_1 = arith.constant 0 : i32
    return %c0_i32, %c0_i32_0 : i32, i32
  }
  func.func @transform_3(%arg0: i32) -> (i32, i32) {
    %c0_i32 = arith.constant 0 : i32
    %c0_i32_0 = arith.constant 0 : i32
    %c0_i32_1 = arith.constant 0 : i32
    return %c0_i32, %c0_i32_0 : i32, i32
  }
  func.func @transform_4(%arg0: i32) -> (i32, i32, i32) {
    %c0_i32 = arith.constant 0 : i32
    %c0_i32_0 = arith.constant 0 : i32
    %c0_i32_1 = arith.constant 0 : i32
    %c0_i32_2 = arith.constant 0 : i32
    return %c0_i32, %c0_i32_0, %c0_i32_1 : i32, i32, i32
  }
  func.func @transform_5(%arg0: i32) -> (i32, i32) {
    %c0_i32 = arith.constant 0 : i32
    %c0_i32_0 = arith.constant 0 : i32
    %c0_i32_1 = arith.constant 0 : i32
    return %c0_i32, %c0_i32_0 : i32, i32
  }
  func.func @transform_6(%arg0: i32) -> (i32, i32) {
    %c0_i32 = arith.constant 0 : i32
    %c0_i32_0 = arith.constant 0 : i32
    %c0_i32_1 = arith.constant 0 : i32
    return %c0_i32, %c0_i32_0 : i32, i32
  }
  func.func @transform_7(%arg0: i32) -> (i32, i32) {
    %c0_i32 = arith.constant 0 : i32
    %c0_i32_0 = arith.constant 0 : i32
    %c0_i32_1 = arith.constant 0 : i32
    return %c0_i32, %c0_i32_0 : i32, i32
  }
  func.func @transform_8(%arg0: i32) -> (i32, i32) {
    %c0_i32 = arith.constant 0 : i32
    %c0_i32_0 = arith.constant 0 : i32
    %c0_i32_1 = arith.constant 0 : i32
    return %c0_i32, %c0_i32_0 : i32, i32
  }
  func.func @transform_9(%arg0: i32) -> (i32, i32) {
    %c0_i32 = arith.constant 0 : i32
    %c0_i32_0 = arith.constant 0 : i32
    %c0_i32_1 = arith.constant 0 : i32
    return %c0_i32, %c0_i32_0 : i32, i32
  }
  func.func @transform_10(%arg0: i32) -> (i32, i32, i32) {
    %c0_i32 = arith.constant 0 : i32
    %c0_i32_0 = arith.constant 0 : i32
    %c0_i32_1 = arith.constant 0 : i32
    return %arg0, %c0_i32, %c0_i32_0 : i32, i32, i32
  }
}

</mosaic_0001>

<bundles_post_ra>
// kernel: tpu_custom_call.1
= control target key start
LH: loop header
LB: loop body
LE: loop exit
PB: predicated region body
PF: predicated region fallthrough
CT: control target
= control target key end

     0   :  { %15 = vsyncpa [#allocation3], 0  ;;  %s1428_s0 = inlined_call_operand.vmem [shape: f32[2,4,256], index: 0, kind: input, shape index: {}]   ;;  %s1429_s1 = inlined_call_operand.vmem [shape: f32[8,4], index: 1, kind: input, shape index: {}]   ;;  %s1430_s2 = inlined_call_operand.vmem [shape: f32[8,1], index: 2, kind: input, shape index: {}]   ;;  %s1431_s3 = inlined_call_operand.vmem [shape: f32[8,1], index: 3, kind: input, shape index: {}]   ;;  %s1432_s4 = inlined_call_operand.hbm [shape: f32[9,8,256], index: 4, kind: input, shape index: {}]   ;;  %s1433_s5 = inlined_call_operand.vmem [shape: f32[8,1], index: 5, kind: input, shape index: {}]   ;;  %s1434_s6 = inlined_call_operand.vmem [shape: f32[8,1], index: 6, kind: input, shape index: {}]   ;;  %s1435_s7 = inlined_call_operand.vmem [shape: f32[4,8], index: 7, kind: input, shape index: {}]   ;;  %s1436_s8 = inlined_call_operand.vmem [shape: f32[4,1], index: 8, kind: input, shape index: {}]   ;;  %s1437_s9 = inlined_call_operand.vmem [shape: f32[4,1], index: 9, kind: input, shape index: {}]   ;;  %s1438_s10 = inlined_call_operand.hbm [shape: f32[2,4,256], index: 10, kind: output, shape index: {}]  }
   0x1   :  { %16 = vsyncpa [#allocation4], 0 }
   0x2   :  { %18 = vsyncpa [#allocation4 + $0x1], 0  ;;  %s1202_s13 = smov 0   ;;  %s1204_s14 = smov 0  }
   0x3   :  { %s1206_s15 = smov 0   ;;  %s1208_s16 = smov 0  }
   0x4 LB: > { %s1223_s17 = sadd.s32 4294967295, %s1126_s16   ;;  %s931_s18 = sadd.s32 4294967294, %s1126_s16   ;;  %s1126_s16 = sphi %s1208_s16, %s1456_s16   ;;  %s1122_s15 = sphi %s1206_s15, %s1455_s15   ;;  %s1118_s14 = sphi %s1204_s14, %s1454_s14   ;;  %s1114_s13 = sphi %s1202_s13, %s1453_s13  }
   0x5   : > { %s1227_s19 = sadd.s32 1, %s1126_s16   ;;  %s246_s20 = sadd.s32 1, %s1122_s15 }
   0x6   : > { %s243_s21 = ssub.s32 %s1126_s16, %s1227_s19  ;;  %p256_p0 = scmp.ne.s32.totalorder %s1122_s15, %s1118_s14 }
   0x7   : > { %p244_p1 = scmp.eq.s32.totalorder %s243_s21, 0  ;;  %p257_p2 = scmp.eq.s32.totalorder %s1223_s17, 1 }
   0x8   : > { %p262_p3 = scmp.ne.s32.totalorder %s1118_s14, %s1114_s13  ;;  %p263_p4 = scmp.eq.s32.totalorder %s931_s18, 1 }
   0x9   : > { %s1238_s22 = scalar_select %p244_p1, %s1122_s15, %s246_s20  }
   0xa   : > { %p1240_p5 = por %p257_p2, %p256_p0  ;;  %p1244_p6 = por %p263_p4, %p262_p3 }
   0xb   : > { %p932_p7 = scmp.ge.s32.totalorder %s1126_s16, 1  ;;  %p270_p8 = scmp.lt.s32.totalorder %s1126_s16, 3 }
   0xc   : > { %p961_p9 = scmp.eq.s32.totalorder %s1223_s17, 0  ;;  %s290_s27 = sshll.u32 %s1432_s4, 4  ;;  %s291_s27 = int_to_ptr.hbm [resolvable:$true] %s290_s27 }
   0xd   : > { %p271_p10 = pnand %p932_p7, %p270_p8  ;;  %s1128_s28 = smov [#allocation2]  }
   0xe   : > { %s292_s29 = sshll.u32 %s1128_s28, 4  ;;  %s1129_s30 = smov 256   ;;  %s293_s29 = int_to_ptr.vmem [resolvable:$true] %s292_s29 }
   0xf   : > { %p953_p11 = pneg %p271_p10  ;;  %s1130_s11 = smov 16  }
  0x10   : > { %331 = sbr.rel (%p271_p10) target bundleno = 389 (0x185), region = 60 }
  0x11   : > { %p954_p12 = pnand %p961_p9, %p953_p11 }
  0x13   : > { %956 = dma.hbm_to_vmem [thread:$0]  (!%p954_p12), %s291_s27, 2304, %s293_s29, [#allocation3], %s1129_s30, %s1129_s30, %s1130_s11  }
  0x15   : > { %1105 = dma.done.wait (%p961_p9), [#allocation3], 2304  }
  0x16   : > { %1107 = vsyncadd (%p961_p9), [#allocation3], 4294964992  ;;  %v1131_v0 = vmov 2   ;;  %v1132_v1 = vmov 1   ;;  %v1133_v2 = vmov 0   ;;  %v378_v3 = vld [vmem:[%s1430_s2] sm:$0xff] }
  0x17   : > { %1017 = vset.pattern.permute.xlu1 %v1131_v0  ;;  %1015 = vset.pattern.permute.xlu0 %v1132_v1  ;;  %v376_v4 = vld [vmem:[%s1429_s1] sm:$0xff]  ;;  %v1134_v6 = vmov 3   ;;  %v464_v7 = vld [vmem:[#allocation2 + $0x8] sm:$0xff]  ;;  %v463_v8 = vld [vmem:[#allocation2] sm:$0xff]  ;;  %s1439_s27 = smov 111   ;;  %s1441_s28 = smov 112  }
  0x18   : > { %1019 = vset.pattern.permute.xlu2 %v1133_v2  ;;  %413 = vperm.xlu1 %1017, %v376_v4   ;;  %v379_v5 = vld [vmem:[%s1431_s3] sm:$0xff]  ;;  %v496_v9 = vld [vmem:[#allocation2 + $0x10] sm:$0xff]  ;;  %v529_v10 = vld [vmem:[#allocation2 + $0x20] sm:$0xff]  ;;  %s1443_s29 = smov 113   ;;  %s1445_s30 = smov 127   ;;  %vm471_vm0 = vcmask 908288  }
  0x19   : > { %442 = vperm.xlu2 %1019, %v378_v3   ;;  %399 = vperm.xlu0 %1015, %v376_v4   ;;  %v497_v11 = vld [vmem:[#allocation2 + $0x18] sm:$0xff]  ;;  %v530_v12 = vld [vmem:[#allocation2 + $0x28] sm:$0xff]  ;;  %v562_v14 = vld [vmem:[#allocation2 + $0x30] sm:$0xff]  ;;  %s1139_s11 = smov 1   ;;  %s1140_s12 = smov 16   ;;  %vm504_vm1 = vcmask 916480  }
  0x1a   : > { %v563_v13 = vld [vmem:[#allocation2 + $0x38] sm:$0xff]  ;;  %v595_v15 = vld [vmem:[#allocation2 + $0x50] sm:$0xff]  ;;  %v626_v18 = vld [vmem:[#allocation2 + $0x60] sm:$0xff]  ;;  %s1141_s18 = smov 15   ;;  %s1142_s20 = smov 17   ;;  %vm537_vm2 = vcmask 924672  }
  0x1b   : > { %v657_v16 = vld [vmem:[#allocation2 + $0x70] sm:$0xff]  ;;  %v596_v17 = vld [vmem:[#allocation2 + $0x58] sm:$0xff]  ;;  %v689_v19 = vld [vmem:[#allocation2 + $0x88] sm:$0xff]  ;;  %p370_p13 = scmp.lt.s32.totalorder %s1223_s17, 1  ;;  %vm570_vm3 = vcmask 1039360   ;;  %vm587_vm4 = vcmask 7168  }
  0x1c   : > { %v627_v20 = vld [vmem:[#allocation2 + $0x68] sm:$0xff]  ;;  %v658_v21 = vld [vmem:[#allocation2 + $0x78] sm:$0xff]  ;;  %v688_v23 = vld [vmem:[#allocation2 + $0x80] sm:$0xff]  ;;  %vm554_vm5 = vcmask 121856   ;;  %vm521_vm6 = vcmask 130048   ;;  %vm488_vm7 = vcmask 138240  }
  0x1d   : > { %v380_v22 = vld [vmem:[%s1433_s5] sm:$0xff]  ;;  %s371_s26 = scalar_select %p370_p13, %s1223_s17, 1  ;;  %vm839_vm8 = vcmask 1043456  }
  0x20   : > { %1018 = vset.pattern.permute.xlu1 %v1134_v6 }
  0x21   : > { %449 = vperm.xlu2 %1019, %v379_v5   ;;  %1016 = vset.pattern.permute.xlu0 %v1133_v2 }
  0x22   : > { %427 = vperm.xlu1 %1018, %v376_v4   ;;  %386 = vperm.xlu0 %1016, %v376_v4  }
  0x29   : > { %469 = vrot.lane.b32.xlu2 %v464_v7, %s1439_s27 }
  0x2a   : > { %467 = vrot.lane.b32.xlu1 %v463_v8, %s1439_s27  ;;  %500 = vrot.lane.b32.xlu0 %v496_v9, %s1441_s28  ;;  %s945_s27 = sshll.u32 %s371_s26, 3 }
  0x2b   : > { %1020 = vset.pattern.permute.xlu1 %v1133_v2 }
  0x31   : > { %533 = vrot.lane.b32.xlu2 %v529_v10, %s1443_s29 }
  0x32   : > { %502 = vrot.lane.b32.xlu1 %v497_v11, %s1441_s28  ;;  %535 = vrot.lane.b32.xlu0 %v530_v12, %s1443_s29  ;;  %s1450_s28 = smov 113   ;;  %s1451_s29 = smov 112  }
  0x39   : > { %568 = vrot.lane.b32.xlu2 %v563_v13, %s1445_s30 }
  0x3a   : > { %566 = vrot.lane.b32.xlu1 %v562_v14, %s1445_s30  ;;  %599 = vrot.lane.b32.xlu0 %v595_v15, %s1139_s11  ;;  %s374_s30 = scalar_lea.vmem %s1428_s0, %s945_s27  ;;  %s1449_s27 = smov 127  }
  0x3b   : > { %v375_v24 = vld [vmem:[%s374_s30] sm:$0xff]  ;;  %s1452_s30 = smov 111  }
  0x3c   : > { %829 = vst [vmem:[#allocation1] ss:$2 sm:$0xff] %v375_v24  ;;  %v402_v28 = vperm.slane %v375_v24, 1  ;;  %v403_v29 = vperm.slane %v375_v24, 5  ;;  %v390_v30 = vperm.slane %v375_v24, 0  ;;  %v391_v31 = vperm.slane %v375_v24, 4 }
  0x3d   : > { %v416_v32 = vperm.slane %v375_v24, 2  ;;  %v417_v33 = vperm.slane %v375_v24, 6  ;;  %v430_v34 = vperm.slane %v375_v24, 3  ;;  %v431_v35 = vperm.slane %v375_v24, 7 }
  0x3e   : > { %v406_v36 = vperm.slane %v402_v28, 1  ;;  %v407_v37 = vperm.slane %v403_v29, 1  ;;  %v394_v38 = vperm.slane %v390_v30, 0  ;;  %v395_v39 = vperm.slane %v391_v31, 0 }
  0x3f   : > { %v420_v40 = vperm.slane %v416_v32, 2  ;;  %v421_v41 = vperm.slane %v417_v33, 2  ;;  %v434_v43 = vperm.slane %v430_v34, 3  ;;  %v435_v44 = vperm.slane %v431_v35, 3 }
  0x41   : > { %661 = vrot.lane.b32.xlu2 %v657_v16, %s1140_s12 }
  0x42   : > { %601 = vrot.lane.b32.xlu1 %v596_v17, %s1139_s11  ;;  %630 = vrot.lane.b32.xlu0 %v626_v18, %s1141_s18 }
  0x49   : > { %694 = vrot.lane.b32.xlu2 %v689_v19, %s1142_s20 }
  0x4a   : > { %632 = vrot.lane.b32.xlu1 %v627_v20, %s1141_s18  ;;  %663 = vrot.lane.b32.xlu0 %v658_v21, %s1140_s12 }
  0x51   : > { %720 = vperm.xlu2 %1019, %v380_v22  }
  0x52   : > { %692 = vrot.lane.b32.xlu1 %v688_v23, %s1142_s20 }
  0x59   : > { %1021 = vset.pattern.permute.xlu2 %v1132_v1 }
  0x73   : > { %v443_v27 = vpop.permute.xlu2 %442 }
  0x7b   : > { %v450_v52 = vpop.permute.xlu2 %449 }
  0x83   : > { %v470_v4 = vpop.permute.xlu2 %469 }
  0x8a   : > { %v414_v25 = vpop.permute.xlu1 %413 }
  0x8b   : > { %v400_v26 = vpop.permute.xlu0 %399  ;;  %v422_v50 = vmul.f32 %v420_v40, %v414_v25  ;;  %v423_v51 = vmul.f32 %v421_v41, %v414_v25  ;;  %v534_v19 = vpop.permute.xlu2 %533 }
  0x8c   : > { %v408_v46 = vmul.f32 %v406_v36, %v400_v26  ;;  %v409_v47 = vmul.f32 %v407_v37, %v400_v26 }
  0x94   : > { %v428_v42 = vpop.permute.xlu1 %427  ;;  %v387_v45 = vpop.permute.xlu0 %386 }
  0x95   : > { %v396_v48 = vmul.f32 %v394_v38, %v387_v45  ;;  %v397_v49 = vmul.f32 %v395_v39, %v387_v45  ;;  %v436_v53 = vmul.f32 %v434_v43, %v428_v42  ;;  %v437_v54 = vmul.f32 %v435_v44, %v428_v42 }
  0x97   : > { %v410_v55 = vadd.f32 %v408_v46, %v396_v48  ;;  %v411_v56 = vadd.f32 %v409_v47, %v397_v49 }
  0x99   : > { %v424_v57 = vadd.f32 %v422_v50, %v410_v55  ;;  %v425_v58 = vadd.f32 %v423_v51, %v411_v56  ;;  %v381_v56 = vld [vmem:[%s1434_s6] sm:$0xff] }
  0x9b   : > { %v438_v59 = vadd.f32 %v436_v53, %v424_v57  ;;  %v439_v60 = vadd.f32 %v437_v54, %v425_v58  ;;  %v377_v57 = vld [vmem:[%s1435_s7] sm:$0xf]  ;;  %v1143_v58 = vmov 4  }
  0x9c   : > { %v468_v63 = vpop.permute.xlu1 %467  ;;  %v501_v13 = vpop.permute.xlu0 %500 }
  0x9d   : > { %v445_v61 = vmul.f32 %v443_v27, %v438_v59  ;;  %v446_v62 = vmul.f32 %v443_v27, %v439_v60  ;;  %v472_v8 = vsel %vm471_vm0, %v468_v63, %v470_v4  ;;  %v569_v27 = vpop.permute.xlu2 %568  ;;  %v383_v59 = vld [vmem:[%s1437_s9] sm:$0xf]  ;;  %v1144_v60 = vmov 5  }
  0x9f   : > { %v452_v1 = vadd.f32 %v450_v52, %v445_v61  ;;  %v453_v3 = vadd.f32 %v450_v52, %v446_v62  ;;  %v1145_v61 = vmov 6   ;;  %v1146_v62 = vmov 7  }
  0xa1   : > { %v454_v5 = vmax.f32 %v452_v1, 0.0  ;;  %v455_v7 = vmax.f32 %v453_v3, 0.0 }
  0xa3   : > { %v1299_v9 = vmin.f32 %v454_v5, 6.0  ;;  %v1301_v10 = vmin.f32 %v455_v7, 6.0 }
  0xa4   : > { %v503_v14 = vpop.permute.xlu1 %502  ;;  %v536_v21 = vpop.permute.xlu0 %535 }
  0xa5   : > { %v476_v11 = vmul.f32 %v468_v63, %v1301_v10  ;;  %v477_v12 = vmul.f32 %v472_v8, %v1299_v9  ;;  %v478_v15 = vmul.f32 %v470_v4, %v1301_v10  ;;  %v505_v16 = vsel %vm504_vm1, %v501_v13, %v503_v14  ;;  %v662_v43 = vpop.permute.xlu2 %661 }
  0xa6   : > { %v510_v17 = vmul.f32 %v505_v16, %v1299_v9  ;;  %v511_v18 = vmul.f32 %v503_v14, %v1301_v10  ;;  %v509_v20 = vmul.f32 %v501_v13, %v1301_v10  ;;  %v538_v23 = vsel %vm537_vm2, %v534_v19, %v536_v21 }
  0xa7   : > { %482 = vrot.lane.b32.xlu0 %v476_v11, %s1142_s20  ;;  %484 = vrot.lane.b32.xlu1 %v477_v12, %s1142_s20  ;;  %v544_v24 = vmul.f32 %v536_v21, %v1301_v10  ;;  %v542_v25 = vmul.f32 %v534_v19, %v1301_v10  ;;  %v543_v26 = vmul.f32 %v538_v23, %v1299_v9  ;;  %v460_v21 = vld [vmem:[#allocation2 + $0x48] sm:$0xff] }
  0xa8   : > { %486 = vrot.lane.b32.xlu2 %v478_v15, %s1142_s20  ;;  %v577_v33 = vmul.f32 %v569_v27, %v1301_v10  ;;  %v669_v49 = vmul.f32 %v662_v43, %v1299_v9 }
  0xac   : > { %v567_v22 = vpop.permute.xlu1 %566  ;;  %v600_v29 = vpop.permute.xlu0 %599 }
  0xad   : > { %v571_v28 = vsel %vm570_vm3, %v567_v22, %v569_v27  ;;  %v575_v30 = vmul.f32 %v567_v22, %v1301_v10  ;;  %v607_v38 = vmul.f32 %v600_v29, %v1299_v9  ;;  %v695_v51 = vpop.permute.xlu2 %694 }
  0xae   : > { %v576_v31 = vmul.f32 %v571_v28, %v1299_v9  ;;  %v702_v53 = vmul.f32 %v695_v51, %v1299_v9 }
  0xaf   : > { %517 = vrot.lane.b32.xlu0 %v510_v17, %s1140_s12  ;;  %519 = vrot.lane.b32.xlu1 %v511_v18, %s1140_s12 }
  0xb0   : > { %515 = vrot.lane.b32.xlu2 %v509_v20, %s1140_s12  ;;  %v459_v20 = vld [vmem:[#allocation2 + $0x40] sm:$0xff] }
  0xb4   : > { %v602_v32 = vpop.permute.xlu1 %601  ;;  %v631_v37 = vpop.permute.xlu0 %630 }
  0xb5   : > { %v603_v34 = vsel %vm587_vm4, %v600_v29, %v602_v32  ;;  %v609_v36 = vmul.f32 %v602_v32, %v1299_v9  ;;  %v638_v44 = vmul.f32 %v631_v37, %v1299_v9 }
  0xb6   : > { %v608_v35 = vmul.f32 %v603_v34, %v1301_v10 }
  0xb7   : > { %552 = vrot.lane.b32.xlu0 %v544_v24, %s1141_s18  ;;  %548 = vrot.lane.b32.xlu1 %v542_v25, %s1141_s18  ;;  %v462_v25 = vmul.f32 %v460_v21, %v1301_v10 }
  0xb8   : > { %550 = vrot.lane.b32.xlu2 %v543_v26, %s1141_s18  ;;  %v461_v26 = vmul.f32 %v459_v20, %v1299_v9 }
  0xbc   : > { %v633_v39 = vpop.permute.xlu1 %632  ;;  %v664_v45 = vpop.permute.xlu0 %663 }
  0xbd   : > { %v634_v40 = vsel %vm554_vm5, %v631_v37, %v633_v39  ;;  %v640_v42 = vmul.f32 %v633_v39, %v1299_v9  ;;  %v665_v46 = vsel %vm521_vm6, %v662_v43, %v664_v45  ;;  %v671_v48 = vmul.f32 %v664_v45, %v1299_v9 }
  0xbe   : > { %v639_v41 = vmul.f32 %v634_v40, %v1301_v10  ;;  %v670_v47 = vmul.f32 %v665_v46, %v1301_v10 }
  0xbf   : > { %581 = vrot.lane.b32.xlu0 %v575_v30, %s1139_s11  ;;  %583 = vrot.lane.b32.xlu1 %v576_v31, %s1139_s11 }
  0xc0   : > { %585 = vrot.lane.b32.xlu2 %v577_v33, %s1139_s11 }
  0xc4   : > { %v693_v50 = vpop.permute.xlu1 %692 }
  0xc5   : > { %v696_v52 = vsel %vm488_vm7, %v693_v50, %v695_v51  ;;  %v700_v55 = vmul.f32 %v693_v50, %v1299_v9 }
  0xc6   : > { %v701_v54 = vmul.f32 %v696_v52, %v1301_v10 }
  0xc7   : > { %615 = vrot.lane.b32.xlu0 %v608_v35, %s1449_s27  ;;  %617 = vrot.lane.b32.xlu1 %v609_v36, %s1449_s27 }
  0xc8   : > { %613 = vrot.lane.b32.xlu2 %v607_v38, %s1449_s27 }
  0xcf   : > { %646 = vrot.lane.b32.xlu0 %v639_v41, %s1450_s28  ;;  %648 = vrot.lane.b32.xlu1 %v640_v42, %s1450_s28 }
  0xd0   : > { %644 = vrot.lane.b32.xlu2 %v638_v44, %s1450_s28  ;;  %s367_s28 = sand.u32 1, %s1118_s14  }
  0xd7   : > { %677 = vrot.lane.b32.xlu0 %v670_v47, %s1451_s29  ;;  %679 = vrot.lane.b32.xlu1 %v671_v48, %s1451_s29 }
  0xd8   : > { %675 = vrot.lane.b32.xlu2 %v669_v49, %s1451_s29  ;;  %s937_s29 = sshll.u32 %s367_s28, 3 }
  0xd9   : > { %s369_s20 = scalar_lea.vmem [#allocation5], %s937_s29  ;;  %s1080_s29 = scalar_lea.hbm %s1438_s10, 16 }
  0xda   : > { %s857_s21 = sshll.u32 %s369_s20, 4  ;;  %s858_s21 = int_to_ptr.vmem [resolvable:$true] %s857_s21 }
  0xdf   : > { %708 = vrot.lane.b32.xlu0 %v701_v54, %s1452_s30  ;;  %710 = vrot.lane.b32.xlu1 %v702_v53, %s1452_s30 }
  0xe0   : > { %706 = vrot.lane.b32.xlu2 %v700_v55, %s1452_s30  ;;  %s946_s30 = sshll.u32 %s1223_s17, 3  ;;  %s844_s17 = scalar_lea.sflag [#allocation4], %s367_s28 }
  0xe1   : > { %s855_s18 = scalar_lea.hbm %s1438_s10, %s946_s30 }
  0xe2   : > { %s859_s25 = sshll.u32 %s855_s18, 4  ;;  %s860_s25 = int_to_ptr.hbm [resolvable:$true] %s859_s25 }
  0xe3   : > { %s1074_s26 = sshra.s32 %s860_s25, 4  ;;  %s1075_s26 = int_to_ptr.hbm [resolvable:$true] %s1074_s26 }
  0xe4   : > { %s1076_s27 = scalar_lea.hbm %s1075_s26, 8  ;;  %p1081_p3 = scmp.lt.s32.totalorder %s1075_s26, %s1438_s10 }
  0xe5   : > { %p1077_p0 = scmp.ne.s32.totalorder %s1075_s26, %s1076_s27  ;;  %p1082_p4 = scmp.lt.s32.totalorder %s1080_s29, %s1076_s27 }
  0xe7   : > { %727 = vperm.xlu0 %1016, %v381_v56   ;;  %738 = vperm.xlu1 %1020, %v377_v57   ;;  %p1078_p1 = pnand %p1077_p0, %p1240_p5  ;;  %p1083_p7 = por %p1082_p4, %p1081_p3 }
  0xe8   : > { %746 = vperm.xlu2 %1021, %v377_v57  }
  0xe9   : > { %p1079_p2 = pneg %p1078_p1 }
  0xeb   : > { %p1084_p8 = pnand %p1083_p7, %p1079_p2 }
  0xef   : > { %1024 = vset.pattern.permute.xlu0 %v1143_v58  ;;  %1022 = vset.pattern.permute.xlu1 %v1131_v0  ;;  %v382_v0 = vld [vmem:[%s1436_s8] sm:$0xf] }
  0xf0   : > { %776 = vperm.xlu0 %1024, %v377_v57   ;;  %756 = vperm.xlu1 %1022, %v377_v57  }
  0xf1   : > { %1023 = vset.pattern.permute.xlu2 %v1134_v6  ;;  %v1373_v6 = vpop.permute.xlu2 %720 }
  0xf2   : > { %766 = vperm.xlu2 %1023, %v377_v57  }
  0xf8   : > { %1025 = vset.pattern.permute.xlu1 %v1144_v60  ;;  %1029 = vset.pattern.permute.xlu0 %v1133_v2 }
  0xf9   : > { %786 = vperm.xlu1 %1025, %v377_v57   ;;  %824 = vperm.xlu0 %1029, %v383_v59  }
  0xfa   : > { %1026 = vset.pattern.permute.xlu2 %v1145_v61 }
  0xfb   : > { %796 = vperm.xlu2 %1026, %v377_v57  }
 0x101   : > { %1027 = vset.pattern.permute.xlu1 %v1146_v62 }
 0x102   : > { %806 = vperm.xlu1 %1027, %v377_v57   ;;  %v487_v63 = vpop.permute.xlu2 %486 }
 0x103   : > { %1028 = vset.pattern.permute.xlu2 %v1133_v2 }
 0x104   : > { %817 = vperm.xlu2 %1028, %v382_v0  }
 0x10a   : > { %v516_v1 = vpop.permute.xlu2 %515 }
 0x112   : > { %v551_v5 = vpop.permute.xlu2 %550 }
 0x119   : > { %v483_v3 = vpop.permute.xlu0 %482  ;;  %v485_v4 = vpop.permute.xlu1 %484 }
 0x11a   : > { %v586_v11 = vpop.permute.xlu2 %585  ;;  %v489_v23 = vsel %vm488_vm7, %v483_v3, %v485_v4  ;;  %v490_v24 = vsel %vm488_vm7, %v485_v4, %v487_v63 }
 0x11b   : > { %v493_v29 = vadd.f32 %v489_v23, %v461_v26  ;;  %v494_v30 = vadd.f32 %v490_v24, %v462_v25 }
 0x121   : > { %v518_v7 = vpop.permute.xlu0 %517  ;;  %v520_v8 = vpop.permute.xlu1 %519 }
 0x122   : > { %v614_v16 = vpop.permute.xlu2 %613  ;;  %v522_v27 = vsel %vm521_vm6, %v516_v1, %v518_v7  ;;  %v523_v28 = vsel %vm521_vm6, %v518_v7, %v520_v8 }
 0x123   : > { %v526_v34 = vadd.f32 %v522_v27, %v493_v29  ;;  %v527_v35 = vadd.f32 %v523_v28, %v494_v30 }
 0x129   : > { %v553_v12 = vpop.permute.xlu0 %552  ;;  %v549_v13 = vpop.permute.xlu1 %548 }
 0x12a   : > { %v645_v19 = vpop.permute.xlu2 %644  ;;  %v556_v32 = vsel %vm554_vm5, %v551_v5, %v553_v12  ;;  %v555_v33 = vsel %vm554_vm5, %v549_v13, %v551_v5 }
 0x12b   : > { %v560_v9 = vadd.f32 %v556_v32, %v527_v35  ;;  %v559_v39 = vadd.f32 %v555_v33, %v526_v34 }
 0x131   : > { %v582_v14 = vpop.permute.xlu0 %581  ;;  %v584_v15 = vpop.permute.xlu1 %583 }
 0x132   : > { %v676_v31 = vpop.permute.xlu2 %675  ;;  %v588_v36 = vsel %vm587_vm4, %v582_v14, %v584_v15  ;;  %v589_v37 = vsel %vm587_vm4, %v584_v15, %v586_v11 }
 0x133   : > { %v592_v42 = vadd.f32 %v588_v36, %v559_v39  ;;  %v593_v43 = vadd.f32 %v589_v37, %v560_v9 }
 0x139   : > { %v616_v17 = vpop.permute.xlu0 %615  ;;  %v618_v18 = vpop.permute.xlu1 %617 }
 0x13a   : > { %v619_v40 = vsel %vm570_vm3, %v614_v16, %v616_v17  ;;  %v620_v41 = vsel %vm570_vm3, %v616_v17, %v618_v18  ;;  %v707_v50 = vpop.permute.xlu2 %706 }
 0x13b   : > { %v623_v46 = vadd.f32 %v619_v40, %v592_v42  ;;  %v624_v47 = vadd.f32 %v620_v41, %v593_v43 }
 0x141   : > { %v647_v2 = vpop.permute.xlu0 %646  ;;  %v649_v22 = vpop.permute.xlu1 %648 }
 0x142   : > { %v650_v44 = vsel %vm537_vm2, %v645_v19, %v647_v2  ;;  %v651_v45 = vsel %vm537_vm2, %v647_v2, %v649_v22  ;;  %v747_v1 = vpop.permute.xlu2 %746 }
 0x143   : > { %v654_v51 = vadd.f32 %v650_v44, %v623_v46  ;;  %v655_v52 = vadd.f32 %v651_v45, %v624_v47 }
 0x149   : > { %v678_v10 = vpop.permute.xlu0 %677  ;;  %v680_v38 = vpop.permute.xlu1 %679 }
 0x14a   : > { %v681_v48 = vsel %vm504_vm1, %v676_v31, %v678_v10  ;;  %v682_v49 = vsel %vm504_vm1, %v678_v10, %v680_v38 }
 0x14b   : > { %v685_v55 = vadd.f32 %v681_v48, %v654_v51  ;;  %v686_v56 = vadd.f32 %v682_v49, %v655_v52 }
 0x14c   : > { %v767_v21 = vpop.permute.xlu2 %766 }
 0x151   : > { %v709_v53 = vpop.permute.xlu0 %708  ;;  %v711_v54 = vpop.permute.xlu1 %710 }
 0x152   : > { %v712_v57 = vsel %vm471_vm0, %v707_v50, %v709_v53  ;;  %v713_v58 = vsel %vm471_vm0, %v709_v53, %v711_v54 }
 0x153   : > { %v716_v59 = vadd.f32 %v712_v57, %v685_v55  ;;  %v717_v60 = vadd.f32 %v713_v58, %v686_v56 }
 0x155   : > { %v723_v61 = vmul.f32 %v1373_v6, %v716_v59  ;;  %v724_v62 = vmul.f32 %v1373_v6, %v717_v60  ;;  %v797_v42 = vpop.permute.xlu2 %796 }
 0x159   : > { %v728_v0 = vpop.permute.xlu0 %727  ;;  %v739_v63 = vpop.permute.xlu1 %738 }
 0x15a   : > { %v730_v3 = vadd.f32 %v728_v0, %v723_v61  ;;  %v731_v4 = vadd.f32 %v728_v0, %v724_v62 }
 0x15c   : > { %v732_v5 = vmax.f32 %v730_v3, 0.0  ;;  %v733_v7 = vmax.f32 %v731_v4, 0.0  ;;  %v830_v4 = vld.sshfl [vmem:[#allocation1] sm:$0xff pattern:$0x75316420] }
 0x15e   : > { %v734_v8 = vmin.f32 %v732_v5, 6.0  ;;  %v735_v11 = vmin.f32 %v733_v7, 6.0  ;;  %v818_v58 = vpop.permute.xlu2 %817 }
 0x160   : > { %v742_v12 = vperm.slane %v735_v11, 0  ;;  %v750_v13 = vperm.slane %v735_v11, 1  ;;  %v741_v14 = vperm.slane %v734_v8, 0  ;;  %v749_v15 = vperm.slane %v734_v8, 1 }
 0x161   : > { %v760_v2 = vperm.slane %v735_v11, 2  ;;  %v770_v23 = vperm.slane %v735_v11, 3  ;;  %v759_v24 = vperm.slane %v734_v8, 2  ;;  %v769_v25 = vperm.slane %v734_v8, 3 }
 0x162   : > { %v752_v16 = vmul.f32 %v750_v13, %v747_v1  ;;  %v743_v17 = vmul.f32 %v741_v14, %v739_v63  ;;  %v744_v18 = vmul.f32 %v742_v12, %v739_v63  ;;  %v751_v19 = vmul.f32 %v749_v15, %v747_v1  ;;  %v757_v20 = vpop.permute.xlu1 %756  ;;  %v777_v34 = vpop.permute.xlu0 %776  ;;  %v831_v63 = vld.sshfl [vmem:[#allocation1 + $0x8] sm:$0xff pattern:$0x75316420] }
 0x163   : > { %v762_v26 = vmul.f32 %v760_v2, %v757_v20  ;;  %v761_v27 = vmul.f32 %v759_v24, %v757_v20  ;;  %v779_v28 = vperm.slane %v734_v8, 4  ;;  %v780_v30 = vperm.slane %v735_v11, 4 }
 0x164   : > { %v754_v6 = vadd.f32 %v752_v16, %v744_v18  ;;  %v753_v22 = vadd.f32 %v751_v19, %v743_v17  ;;  %v772_v31 = vmul.f32 %v770_v23, %v767_v21  ;;  %v771_v33 = vmul.f32 %v769_v25, %v767_v21 }
 0x165   : > { %v790_v37 = vperm.slane %v735_v11, 5  ;;  %v789_v38 = vperm.slane %v734_v8, 5  ;;  %v781_v9 = vmul.f32 %v779_v28, %v777_v34  ;;  %v782_v39 = vmul.f32 %v780_v30, %v777_v34 }
 0x166   : > { %v764_v29 = vadd.f32 %v762_v26, %v754_v6  ;;  %v763_v32 = vadd.f32 %v761_v27, %v753_v22  ;;  %v799_v43 = vperm.slane %v734_v8, 6  ;;  %v800_v44 = vperm.slane %v735_v11, 6 }
 0x167   : > { %v810_v51 = vperm.slane %v735_v11, 7  ;;  %v809_v52 = vperm.slane %v734_v8, 7 }
 0x168   : > { %v773_v35 = vadd.f32 %v771_v33, %v763_v32  ;;  %v774_v36 = vadd.f32 %v772_v31, %v764_v29  ;;  %v801_v49 = vmul.f32 %v799_v43, %v797_v42  ;;  %v802_v50 = vmul.f32 %v800_v44, %v797_v42 }
 0x16a   : > { %v784_v45 = vadd.f32 %v782_v39, %v774_v36  ;;  %v783_v46 = vadd.f32 %v781_v9, %v773_v35 }
 0x16b   : > { %v787_v10 = vpop.permute.xlu1 %786  ;;  %v825_v61 = vpop.permute.xlu0 %824 }
 0x16c   : > { %v791_v40 = vmul.f32 %v789_v38, %v787_v10  ;;  %v792_v41 = vmul.f32 %v790_v37, %v787_v10 }
 0x16e   : > { %v793_v47 = vadd.f32 %v791_v40, %v783_v46  ;;  %v794_v48 = vadd.f32 %v792_v41, %v784_v45 }
 0x170   : > { %v803_v56 = vadd.f32 %v801_v49, %v793_v47  ;;  %v804_v57 = vadd.f32 %v802_v50, %v794_v48 }
 0x174   : > { %v807_v53 = vpop.permute.xlu1 %806 }
 0x175   : > { %v811_v54 = vmul.f32 %v809_v52, %v807_v53  ;;  %v812_v55 = vmul.f32 %v810_v51, %v807_v53 }
 0x177   : > { %v813_v59 = vadd.f32 %v811_v54, %v803_v56  ;;  %v814_v60 = vadd.f32 %v812_v55, %v804_v57 }
 0x179   : > { %v820_v62 = vmul.f32 %v818_v58, %v813_v59  ;;  %v821_v0 = vmul.f32 %v818_v58, %v814_v60 }
 0x17b   : > { %v827_v1 = vadd.f32 %v825_v61, %v820_v62  ;;  %v828_v3 = vadd.f32 %v825_v61, %v821_v0 }
 0x17d   : > { %v835_v5 = vadd.f32 %v831_v63, %v828_v3  ;;  %v834_v7 = vadd.f32 %v830_v4, %v827_v1 }
 0x17f   : > { %v838_v8 = vrot.slane %v835_v5, 4 }
 0x181   : > { %v840_v11 = vsel %vm839_vm8, %v834_v7, %v838_v8 }
 0x182   : > { %842 = vst [vmem:[%s369_s20] sm:$0xff] %v840_v11 }
 0x183   : > { %1087 = shalt.err (!%p1084_p8)
}
 0x184   : > { %951 = dma.vmem_to_hbm [thread:$0]  (%p1240_p5), %s858_s21, 128, %s860_s25, %s844_s17  }
 0x185 PF: > { %p963_p9 = scmp.ge.s32.totalorder %s1126_s16, 2  ;;  %s871_s28 = sand.u32 1, %s1114_s13  }
 0x186   : > { %s872_s20 = scalar_lea.sflag [#allocation4], %s871_s28 }
 0x187   : > { %p958_p10 = pnand %p963_p9, %p1244_p6 }
 0x189   : > { %p959_p11 = pneg %p958_p10 }
 0x18b   : > { %1109 = dma.done.wait (%p959_p11), %s872_s20, 128  }
 0x18c   : > { %1111 = vsyncadd (%p959_p11), %s872_s20, 4294967168  ;;  %p21_p12 = scmp.ge.s32.totalorder %s1227_s19, 4   ;;  %s1453_s13 = smov %s1118_s14 }
 0x18d   : > { %s1454_s14 = smov %s1122_s15  ;;  %s1455_s15 = smov %s1238_s22 }
 0x18e   : > { %s1456_s16 = smov %s1227_s19  ;;  %23 = sbr.rel (!%p21_p12) target bundleno = 4 (0x4), region = 108 }
 0x193   :  { %878 = vsyncpa [#allocation3], 1 }
 0x194   :  { %880 = vsyncpa [#allocation3 + $0x1], 1 }
 0x195   :  { %881 = vsyncpa [#allocation4], 1 }
 0x196   :  { %883 = vsyncpa [#allocation4 + $0x1], 1 }

</bundles_post_ra>
